<compile_context>
chip_gen: v6e
topology: v6e:2x2x1
jax: 0.10.0
libtpu: 0.0.40
codegen_flags: <defaults>
</compile_context>

<pallas_src>
from functools import partial

import jax
import jax.numpy as jnp
from jax.experimental import pallas as pl
from jax.experimental.pallas import tpu as pltpu


def _round_up(n, m):
    return (n + m - 1) // m * m


def rnn_fc_kernel(ids_ref, emb_ref, whh_ref, wfc_ref, bfc_ref, out_ref):
    # ids_ref : (S*Bp, 1) int32, time-major token ids (row t*Bp + b)
    # emb_ref : (V8, H)   pre-projected table: emb @ W_ih + (b_ih + b_hh)
    # whh_ref : (H, H)    hidden->hidden weight, stored (in, out)
    # wfc_ref : (H, Vp)   FC weight, vocab dim padded to a multiple of 128
    # bfc_ref : (1, Vp)   FC bias, padded
    # out_ref : (Bp, Vp)  lane-dense logits (padded rows/cols sliced outside)
    SB = ids_ref.shape[0]
    Bp = out_ref.shape[0]
    S = SB // Bp
    V8 = emb_ref.shape[0]

    whh = whh_ref[...]  # hoist: read the recurrent weight once

    # In-kernel embedding "gather": one-hot(ids) @ pre-projected table.
    # V is tiny, so this is a single (S*Bp, V8) x (V8, H) MXU op producing the
    # whole pre-activation slab (input projection + both biases pre-folded).
    ids = ids_ref[...]                                              # (S*Bp, 1)
    onehot = (jax.lax.broadcasted_iota(jnp.int32, (SB, V8), 1)
              == ids).astype(jnp.float32)                           # (S*Bp, V8)
    pre = jnp.dot(onehot, emb_ref[...],
                  preferred_element_type=jnp.float32)               # (S*Bp, H)

    # t = 0: previous hidden state is zero -> skip the recurrent matmul.
    h = jnp.tanh(pre[0:Bp, :])

    # Remaining steps fully unrolled (S static & small); every slice is a
    # whole-vreg (8, 128) static slice on the serial critical path.
    for t in range(1, S):
        h = jnp.tanh(pre[t * Bp:(t + 1) * Bp, :]
                     + jnp.dot(h, whh, preferred_element_type=jnp.float32))

    # Final FC on the last hidden state; unmasked lane-dense (Bp, Vp) store.
    out_ref[...] = (jnp.dot(h, wfc_ref[...], preferred_element_type=jnp.float32)
                    + bfc_ref[...]).astype(out_ref.dtype)


def prepare_params(params):
    """One-time parameter prep (runs once, outside the per-call path)."""
    emb = params["emb"].astype(jnp.float32)                 # (V, D), row 0 zeroed
    w_ih = params["w_ih"].astype(jnp.float32)               # (D, H)
    bias = (params["b_ih"] + params["b_hh"]).astype(jnp.float32)   # (1, H)
    V, _ = emb.shape
    # Pre-projected embedding table: row v == emb[v] @ W_ih + (b_ih + b_hh).
    # (Row 0 correctly becomes just the bias, matching padding_idx=0 inference.)
    emb_proj = emb @ w_ih + bias                            # (V, H)
    V8 = _round_up(V, 8)
    emb_proj = jnp.pad(emb_proj, ((0, V8 - V), (0, 0)))     # sublane-aligned rows
    Vp = _round_up(V, 128)                                  # lane-dense FC output
    w_fc = jnp.pad(params["w_fc"].astype(jnp.float32), ((0, 0), (0, Vp - V)))
    b_fc = jnp.pad(params["b_fc"].astype(jnp.float32), ((0, 0), (0, Vp - V)))
    return dict(emb_proj=emb_proj,
                w_hh=params["w_hh"].astype(jnp.float32),
                w_fc=w_fc, b_fc=b_fc)


@partial(jax.jit, static_argnames=("vocab_size",))
def torch_model_forward(x_ids, prepped, *, vocab_size):
    """x_ids: (B, S) int32 token ids. Returns logits (B, V) like TorchModel.forward(x)."""
    emb_proj = prepped["emb_proj"]          # (V8, H)
    w_hh = prepped["w_hh"]                  # (H, H)
    w_fc = prepped["w_fc"]                  # (H, Vp)
    b_fc = prepped["b_fc"]                  # (1, Vp)
    B, S = x_ids.shape
    Vp = w_fc.shape[1]

    # Pad batch to a whole sublane group; padded rows use token 0 and their
    # outputs are sliced off below.
    Bp = _round_up(max(B, 8), 8)
    ids = jnp.pad(x_ids.astype(jnp.int32), ((0, Bp - B), (0, 0)))   # (Bp, S)
    ids_tm = ids.T.reshape(S * Bp, 1)                               # time-major

    vmem = pl.BlockSpec(memory_space=pltpu.MemorySpace.VMEM)
    out_padded = pl.pallas_call(
        rnn_fc_kernel,
        out_shape=jax.ShapeDtypeStruct((Bp, Vp), jnp.float32),
        in_specs=[vmem] * 5,
        out_specs=vmem,
    )(ids_tm, emb_proj, w_hh, w_fc, b_fc)
    return out_padded[:B, :vocab_size]


def make_params(key, vocab_size, vector_dim, hidden=128):
    ks = jax.random.split(key, 6)
    scale = 0.1
    emb = scale * jax.random.normal(ks[0], (vocab_size, vector_dim), jnp.float32)
    emb = emb.at[0].set(0.0)  # padding_idx=0
    # PyTorch RNN weights are (H, D) / (H, H); we store transposed (in, out).
    w_ih = scale * jax.random.normal(ks[1], (vector_dim, hidden), jnp.float32)
    w_hh = scale * jax.random.normal(ks[2], (hidden, hidden), jnp.float32)
    b_ih = scale * jax.random.normal(ks[3], (1, hidden), jnp.float32)
    b_hh = scale * jax.random.normal(ks[4], (1, hidden), jnp.float32)
    # PyTorch Linear weight is (V, H); stored transposed (H, V).
    w_fc = scale * jax.random.normal(ks[5], (hidden, vocab_size), jnp.float32)
    b_fc = jnp.zeros((1, vocab_size), jnp.float32)
    return dict(emb=emb, w_ih=w_ih, w_hh=w_hh, b_ih=b_ih, b_hh=b_hh,
                w_fc=w_fc, b_fc=b_fc)


def reference_forward(x_ids, params):
    """Pure-JAX replica of the PyTorch forward (for correctness check)."""
    xe = jnp.take(params["emb"], x_ids, axis=0)  # (B, S, D)
    B, S, D = xe.shape
    H = params["w_hh"].shape[0]
    h = jnp.zeros((B, H), jnp.float32)
    for t in range(S):
        h = jnp.tanh(xe[:, t, :] @ params["w_ih"] + params["b_ih"]
                     + h @ params["w_hh"] + params["b_hh"])
    return h @ params["w_fc"] + params["b_fc"]


if __name__ == "__main__":
    key = jax.random.PRNGKey(0)
    vocab_size = 30        # len(vocab)
    vector_dim = 32
    sentence_length = 8
    batch = 2

    k_par, k_ids = jax.random.split(key)
    params = make_params(k_par, vocab_size, vector_dim)
    prepped = prepare_params(params)
    x_ids = jax.random.randint(k_ids, (batch, sentence_length), 0, vocab_size,
                               dtype=jnp.int32)

    logits = torch_model_forward(x_ids, prepped, vocab_size=vocab_size)
    logits = jax.block_until_ready(logits)

    ref = reference_forward(x_ids, params)
    assert logits.shape == (batch, vocab_size)
    assert jnp.allclose(logits, ref, atol=1e-4, rtol=1e-4), "mismatch vs JAX reference"

    print("KERNEL_OK")
</pallas_src>

<mosaic_0001>
module attributes {stable_mosaic.version = 11 : i64} {
  func.func @rnn_fc_kernel(%arg0: memref<64x1xi32, #tpu.memory_space<vmem>>, %arg1: memref<32x128xf32, #tpu.memory_space<vmem>>, %arg2: memref<128x128xf32, #tpu.memory_space<vmem>>, %arg3: memref<128x128xf32, #tpu.memory_space<vmem>>, %arg4: memref<1x128xf32, #tpu.memory_space<vmem>>, %arg5: memref<8x128xf32, #tpu.memory_space<vmem>>) attributes {dimension_semantics = [], scalar_prefetch = 0 : i64, scratch_operands = 0 : i64, tpu.core_type = #tpu.core_type<tc>} {
    %c0 = arith.constant 0 : index
    %c0_0 = arith.constant 0 : index
    %0 = vector.load %arg2[%c0, %c0_0] : memref<128x128xf32, #tpu.memory_space<vmem>>, vector<128x128xf32>
    %c0_1 = arith.constant 0 : index
    %c0_2 = arith.constant 0 : index
    %1 = vector.load %arg0[%c0_1, %c0_2] : memref<64x1xi32, #tpu.memory_space<vmem>>, vector<64x1xi32>
    %2 = tpu.iota {dimensions = array<i32: 1>} : vector<64x32xi32>
    %3 = vector.broadcast %1 : vector<64x1xi32> to vector<64x32xi32>
    %4 = arith.cmpi eq, %2, %3 : vector<64x32xi32>
    %5 = arith.extui %4 : vector<64x32xi1> to vector<64x32xi32>
    %6 = arith.sitofp %5 : vector<64x32xi32> to vector<64x32xf32>
    %c0_3 = arith.constant 0 : index
    %c0_4 = arith.constant 0 : index
    %7 = vector.load %arg1[%c0_3, %c0_4] : memref<32x128xf32, #tpu.memory_space<vmem>>, vector<32x128xf32>
    %cst = arith.constant dense<0.000000e+00> : vector<64x128xf32>
    %8 = tpu.matmul %6, %7, %cst {dimension_numbers = #tpu.dot_dimension_numbers<[1], [0], [0], [1], [0, 0, 1, 1], [], []>} : vector<64x32xf32>, vector<32x128xf32>, vector<64x128xf32> -> vector<64x128xf32>
    %9 = vector.extract_strided_slice %8 {offsets = [0, 0], sizes = [8, 128], strides = [1, 1]} : vector<64x128xf32> to vector<8x128xf32>
    %10 = math.tanh %9 : vector<8x128xf32>
    %11 = vector.extract_strided_slice %8 {offsets = [8, 0], sizes = [8, 128], strides = [1, 1]} : vector<64x128xf32> to vector<8x128xf32>
    %cst_5 = arith.constant dense<0.000000e+00> : vector<8x128xf32>
    %12 = tpu.matmul %10, %0, %cst_5 {dimension_numbers = #tpu.dot_dimension_numbers<[1], [0], [0], [1], [0, 0, 1, 1], [], []>} : vector<8x128xf32>, vector<128x128xf32>, vector<8x128xf32> -> vector<8x128xf32>
    %13 = arith.addf %11, %12 : vector<8x128xf32>
    %14 = math.tanh %13 : vector<8x128xf32>
    %15 = vector.extract_strided_slice %8 {offsets = [16, 0], sizes = [8, 128], strides = [1, 1]} : vector<64x128xf32> to vector<8x128xf32>
    %cst_6 = arith.constant dense<0.000000e+00> : vector<8x128xf32>
    %16 = tpu.matmul %14, %0, %cst_6 {dimension_numbers = #tpu.dot_dimension_numbers<[1], [0], [0], [1], [0, 0, 1, 1], [], []>} : vector<8x128xf32>, vector<128x128xf32>, vector<8x128xf32> -> vector<8x128xf32>
    %17 = arith.addf %15, %16 : vector<8x128xf32>
    %18 = math.tanh %17 : vector<8x128xf32>
    %19 = vector.extract_strided_slice %8 {offsets = [24, 0], sizes = [8, 128], strides = [1, 1]} : vector<64x128xf32> to vector<8x128xf32>
    %cst_7 = arith.constant dense<0.000000e+00> : vector<8x128xf32>
    %20 = tpu.matmul %18, %0, %cst_7 {dimension_numbers = #tpu.dot_dimension_numbers<[1], [0], [0], [1], [0, 0, 1, 1], [], []>} : vector<8x128xf32>, vector<128x128xf32>, vector<8x128xf32> -> vector<8x128xf32>
    %21 = arith.addf %19, %20 : vector<8x128xf32>
    %22 = math.tanh %21 : vector<8x128xf32>
    %23 = vector.extract_strided_slice %8 {offsets = [32, 0], sizes = [8, 128], strides = [1, 1]} : vector<64x128xf32> to vector<8x128xf32>
    %cst_8 = arith.constant dense<0.000000e+00> : vector<8x128xf32>
    %24 = tpu.matmul %22, %0, %cst_8 {dimension_numbers = #tpu.dot_dimension_numbers<[1], [0], [0], [1], [0, 0, 1, 1], [], []>} : vector<8x128xf32>, vector<128x128xf32>, vector<8x128xf32> -> vector<8x128xf32>
    %25 = arith.addf %23, %24 : vector<8x128xf32>
    %26 = math.tanh %25 : vector<8x128xf32>
    %27 = vector.extract_strided_slice %8 {offsets = [40, 0], sizes = [8, 128], strides = [1, 1]} : vector<64x128xf32> to vector<8x128xf32>
    %cst_9 = arith.constant dense<0.000000e+00> : vector<8x128xf32>
    %28 = tpu.matmul %26, %0, %cst_9 {dimension_numbers = #tpu.dot_dimension_numbers<[1], [0], [0], [1], [0, 0, 1, 1], [], []>} : vector<8x128xf32>, vector<128x128xf32>, vector<8x128xf32> -> vector<8x128xf32>
    %29 = arith.addf %27, %28 : vector<8x128xf32>
    %30 = math.tanh %29 : vector<8x128xf32>
    %31 = vector.extract_strided_slice %8 {offsets = [48, 0], sizes = [8, 128], strides = [1, 1]} : vector<64x128xf32> to vector<8x128xf32>
    %cst_10 = arith.constant dense<0.000000e+00> : vector<8x128xf32>
    %32 = tpu.matmul %30, %0, %cst_10 {dimension_numbers = #tpu.dot_dimension_numbers<[1], [0], [0], [1], [0, 0, 1, 1], [], []>} : vector<8x128xf32>, vector<128x128xf32>, vector<8x128xf32> -> vector<8x128xf32>
    %33 = arith.addf %31, %32 : vector<8x128xf32>
    %34 = math.tanh %33 : vector<8x128xf32>
    %35 = vector.extract_strided_slice %8 {offsets = [56, 0], sizes = [8, 128], strides = [1, 1]} : vector<64x128xf32> to vector<8x128xf32>
    %cst_11 = arith.constant dense<0.000000e+00> : vector<8x128xf32>
    %36 = tpu.matmul %34, %0, %cst_11 {dimension_numbers = #tpu.dot_dimension_numbers<[1], [0], [0], [1], [0, 0, 1, 1], [], []>} : vector<8x128xf32>, vector<128x128xf32>, vector<8x128xf32> -> vector<8x128xf32>
    %37 = arith.addf %35, %36 : vector<8x128xf32>
    %38 = math.tanh %37 : vector<8x128xf32>
    %c0_12 = arith.constant 0 : index
    %c0_13 = arith.constant 0 : index
    %39 = vector.load %arg3[%c0_12, %c0_13] : memref<128x128xf32, #tpu.memory_space<vmem>>, vector<128x128xf32>
    %cst_14 = arith.constant dense<0.000000e+00> : vector<8x128xf32>
    %40 = tpu.matmul %38, %39, %cst_14 {dimension_numbers = #tpu.dot_dimension_numbers<[1], [0], [0], [1], [0, 0, 1, 1], [], []>} : vector<8x128xf32>, vector<128x128xf32>, vector<8x128xf32> -> vector<8x128xf32>
    %c0_15 = arith.constant 0 : index
    %c0_16 = arith.constant 0 : index
    %41 = vector.load %arg4[%c0_15, %c0_16] : memref<1x128xf32, #tpu.memory_space<vmem>>, vector<1x128xf32>
    %42 = vector.broadcast %41 : vector<1x128xf32> to vector<8x128xf32>
    %43 = arith.addf %40, %42 : vector<8x128xf32>
    %c0_17 = arith.constant 0 : index
    %c0_18 = arith.constant 0 : index
    %44 = vector.load %arg5[%c0_17, %c0_18] : memref<8x128xf32, #tpu.memory_space<vmem>>, vector<8x128xf32>
    tpu.vector_store %arg5[%c0_17, %c0_18], %43 {strides = array<i32>} : memref<8x128xf32, #tpu.memory_space<vmem>>, vector<8x128xf32>,
    return
  }
}

</mosaic_0001>

<bundles_post_ra>
// kernel: torch_model_forward.1
= control target key start
LH: loop header
LB: loop body
LE: loop exit
PB: predicated region body
PF: predicated region fallthrough
CT: control target
= control target key end

     0   :  { %10 = vsyncpa [#allocation3], 0  ;;  %s1806_s0 = inlined_call_operand.vmem [shape: s32[64,1], index: 0, kind: input, shape index: {}]   ;;  %s1807_s1 = inlined_call_operand.vmem [shape: f32[32,128], index: 1, kind: input, shape index: {}]   ;;  %s1808_s2 = inlined_call_operand.hbm [shape: f32[128,128], index: 2, kind: input, shape index: {}]   ;;  %s1809_s3 = inlined_call_operand.hbm [shape: f32[128,128], index: 3, kind: input, shape index: {}]   ;;  %s1810_s4 = inlined_call_operand.vmem [shape: f32[1,128], index: 4, kind: input, shape index: {}]   ;;  %s1811_s5 = inlined_call_operand.vmem [shape: f32[8,128], index: 5, kind: output, shape index: {}]  }
   0x1   :  { %11 = vsyncpa [#allocation5], 0  ;;  %s1395_s18 = smov [#allocation2]  }
   0x2   :  { %s21_s19 = sshll.u32 %s1395_s18, 4  ;;  %s22_s19 = int_to_ptr.vmem [resolvable:$true] %s21_s19 }
   0x3   :  { %s1359_s20 = scalar_lea.vmem %s22_s19, 2048  ;;  %p1364_p1 = scmp.lt.s32.totalorder %s22_s19, %s22_s19 }
   0x4   :  { %p1360_p0 = scmp.ne.s32.totalorder %s22_s19, %s1359_s20  ;;  %p1365_p2 = scmp.lt.s32.totalorder %s1359_s20, %s1359_s20 }
   0x6   :  { %p1366_p3 = por %p1365_p2, %p1364_p1 }
   0x8   :  { %p1367_p4 = pnand %p1366_p3, %p1360_p0 }
   0xa   :  { %1370 = shalt.err (!%p1367_p4)
}
   0xb   :  { %s1396_s21 = smov 128   ;;  %s1397_s22 = smov 8  }
   0xc   :  { %27 = dma.hbm_to_vmem [thread:$0]  %s1808_s2, 2048, %s22_s19, [#allocation3], %s1396_s21, %s1396_s21, %s1397_s22  }
   0xd   :  { %s1398_s25 = smov [#allocation4]  }
   0xe   :  { %s33_s26 = sshll.u32 %s1398_s25, 4  ;;  %s34_s26 = int_to_ptr.vmem [resolvable:$true] %s33_s26 }
   0xf   :  { %s1379_s27 = scalar_lea.vmem %s34_s26, 2048  ;;  %p1384_p6 = scmp.lt.s32.totalorder %s34_s26, %s34_s26 }
  0x10   :  { %p1380_p5 = scmp.ne.s32.totalorder %s34_s26, %s1379_s27  ;;  %p1385_p7 = scmp.lt.s32.totalorder %s1379_s27, %s1379_s27 }
  0x12   :  { %p1386_p8 = por %p1385_p7, %p1384_p6 }
  0x14   :  { %p1387_p9 = pnand %p1386_p8, %p1380_p5 }
  0x16   :  { %1390 = shalt.err (!%p1387_p9)
}
  0x17   :  { %39 = dma.hbm_to_vmem [thread:$0]  %s1809_s3, 2048, %s34_s26, [#allocation5], %s1396_s21, %s1396_s21, %s1397_s22  }
  0x18   :  { %1391 = dma.done.wait [#allocation3], 2048  }
  0x19   :  { %1392 = vsyncadd [#allocation3], 4294965248 }
  0x1a   :  { %1393 = dma.done.wait [#allocation5], 2048  }
  0x1b   :  { %1394 = vsyncadd [#allocation5], 4294965248  ;;  %v1399_v0 = vmov 0   ;;  %v1400_v1 = vmov 0.0   ;;  %v64_v2 = vld [vmem:[%s1806_s0] sm:$0xff]  ;;  %v66_v3 = vld [vmem:[%s1806_s0 + $0x10] sm:$0xff]  ;;  %v72_v20 = vlaneseq }
  0x1c   :  { %1333 = vset.pattern.permute.xlu0 %v1399_v0  ;;  %1334 = vset.pattern.permute.xlu1 %v1399_v0  ;;  %v65_v4 = vld [vmem:[%s1806_s0 + $0x8] sm:$0xff]  ;;  %v67_v5 = vld [vmem:[%s1806_s0 + $0x18] sm:$0xff]  ;;  %v124_v7 = vld [vmem:[%s1807_s1 + $0x10] sm:$0xff]  ;;  %vm126_vm0 = vcmask 261120   ;;  %vm1401_vm8 = vmmov 0  }
  0x1d   :  { %1046 = vmatprep.subr.mxu1 %v1400_v1  ;;  %75 = vperm.xlu0 %1333, %v64_v2   ;;  %v125_v6 = vld [vmem:[%s1807_s1 + $0x18] sm:$0xff]  ;;  %v123_v8 = vld [vmem:[%s1807_s1 + $0x8] sm:$0xff]  ;;  %v68_v9 = vld [vmem:[%s1806_s0 + $0x20] sm:$0xff]  ;;  %v1501_v21 = vand.u32 127, %v72_v20 }
  0x1e   :  { %81 = vperm.xlu1 %1334, %v66_v3   ;;  %1026 = vmatprep.subr.mxu0 %v125_v6  ;;  %v69_v10 = vld [vmem:[%s1806_s0 + $0x28] sm:$0xff]  ;;  %v122_v11 = vld [vmem:[%s1807_s1] sm:$0xff]  ;;  %v70_v12 = vld [vmem:[%s1806_s0 + $0x30] sm:$0xff] }
  0x1f   :  { %1027 = vmatpush3.msra.mxu0 %v125_v6  ;;  %v1472_v13 = vld [vmem:[#allocation2 + $0x78] sm:$0xff]  ;;  %v1474_v14 = vld [vmem:[#allocation2 + $0x70] sm:$0xff]  ;;  %v1478_v15 = vld [vmem:[#allocation2 + $0x68] sm:$0xff]  ;;  %1078 = vmatprep.mubr.msk.f32.mxu1 %vm1401_vm8, %v1400_v1 }
  0x20   :  { %1028 = vmatprep.subr.mxu0 %v124_v7  ;;  %1047 = vmatpush3.msra.mxu1 %v1472_v13  ;;  %v1483_v16 = vld [vmem:[#allocation2 + $0x60] sm:$0xff]  ;;  %v1487_v17 = vld [vmem:[#allocation2 + $0x58] sm:$0xff]  ;;  %v1491_v18 = vld [vmem:[#allocation2 + $0x50] sm:$0xff] }
  0x21   :  { %78 = vperm.xlu0 %1333, %v65_v4   ;;  %1029 = vmatpush3.msra.mxu0 %v124_v7  ;;  %v1495_v19 = vld [vmem:[#allocation2 + $0x48] sm:$0xff]  ;;  %v1538_v36 = vld [vmem:[#allocation2 + $0x40] sm:$0xff]  ;;  %v1543_v37 = vld [vmem:[#allocation2 + $0x38] sm:$0xff] }
  0x22   :  { %84 = vperm.xlu1 %1334, %v67_v5   ;;  %1030 = vmatprep.subr.mxu0 %v123_v8  ;;  %v1549_v38 = vld [vmem:[#allocation2 + $0x30] sm:$0xff]  ;;  %v1551_v39 = vld [vmem:[#allocation2 + $0x28] sm:$0xff]  ;;  %v1558_v40 = vld [vmem:[#allocation2 + $0x20] sm:$0xff] }
  0x23   :  { %1031 = vmatpush3.msra.mxu0 %v123_v8  ;;  %1048 = vmatprep.subr.mxu1 %v1400_v1  ;;  %v1564_v41 = vld [vmem:[#allocation2 + $0x18] sm:$0xff]  ;;  %v1570_v42 = vld [vmem:[#allocation2 + $0x10] sm:$0xff]  ;;  %v1576_v43 = vld [vmem:[#allocation2 + $0x8] sm:$0xff] }
  0x24   :  { %1032 = vmatprep.subr.mxu0 %v122_v11  ;;  %1049 = vmatpush3.msra.mxu1 %v1474_v14  ;;  %v1582_v44 = vld [vmem:[#allocation2] sm:$0xff]  ;;  %v71_v45 = vld [vmem:[%s1806_s0 + $0x38] sm:$0xff]  ;;  %v770_v20 = vld [vmem:[#allocation4 + $0x48] sm:$0xff] }
  0x25   :  { %87 = vperm.xlu0 %1333, %v68_v9   ;;  %1033 = vmatpush3.msra.mxu0 %v122_v11 }
  0x26   :  { %90 = vperm.xlu1 %1334, %v69_v10   ;;  %1081 = vmatprep.subr.mxu0 %v1400_v1 }
  0x27   :  { %1050 = vmatprep.subr.mxu1 %v1400_v1 }
  0x28   :  { %1051 = vmatpush3.msra.mxu1 %v1478_v15 }
  0x29   :  { %93 = vperm.xlu0 %1333, %v70_v12   ;;  %1052 = vmatprep.subr.mxu1 %v1400_v1 }
  0x2a   :  { %1053 = vmatpush3.msra.mxu1 %v1483_v16  ;;  %96 = vperm.xlu1 %1334, %v71_v45  }
  0x2b   :  { %1054 = vmatprep.subr.mxu1 %v1400_v1 }
  0x2c   :  { %1055 = vmatpush3.msra.mxu1 %v1487_v17 }
  0x2d   :  { %1056 = vmatprep.subr.mxu1 %v1400_v1 }
  0x2e   :  { %1057 = vmatpush3.msra.mxu1 %v1491_v18 }
  0x2f   :  { %1058 = vmatprep.subr.mxu1 %v1400_v1 }
  0x30   :  { %1059 = vmatpush3.msra.mxu1 %v1495_v19 }
  0x31   :  { %1060 = vmatprep.subr.mxu1 %v1400_v1 }
  0x32   :  { %1061 = vmatpush3.msra.mxu1 %v1538_v36 }
  0x33   :  { %1062 = vmatprep.subr.mxu1 %v1400_v1 }
  0x34   :  { %1063 = vmatpush3.msra.mxu1 %v1543_v37 }
  0x35   :  { %1064 = vmatprep.subr.mxu1 %v1400_v1 }
  0x36   :  { %1065 = vmatpush3.msra.mxu1 %v1549_v38 }
  0x37   :  { %1066 = vmatprep.subr.mxu1 %v1400_v1 }
  0x38   :  { %1067 = vmatpush3.msra.mxu1 %v1551_v39 }
  0x39   :  { %1068 = vmatprep.subr.mxu1 %v1400_v1 }
  0x3a   :  { %1069 = vmatpush3.msra.mxu1 %v1558_v40 }
  0x3b   :  { %1070 = vmatprep.subr.mxu1 %v1400_v1 }
  0x3c   :  { %1071 = vmatpush3.msra.mxu1 %v1564_v41 }
  0x3d   :  { %1072 = vmatprep.subr.mxu1 %v1400_v1 }
  0x3e   :  { %1073 = vmatpush3.msra.mxu1 %v1570_v42 }
  0x3f   :  { %1074 = vmatprep.subr.mxu1 %v1400_v1 }
  0x40   :  { %1075 = vmatpush3.msra.mxu1 %v1576_v43 }
  0x41   :  { %1076 = vmatprep.subr.mxu1 %v1400_v1 }
  0x42   :  { %1077 = vmatpush3.msra.mxu1 %v1582_v44 }
  0x43   :  { %1116 = vmatprep.subr.mxu1 %v1400_v1 }
  0x98   :  { %v76_v22 = vpop.permute.xlu0 %75 }
  0x99   :  { %v82_v23 = vpop.permute.xlu1 %81  ;;  %vm98_vm1 = vcmp.eq.s32.totalorder %v1501_v21, %v76_v22 }
  0x9a   :  { %v861_v24 = vsel %vm98_vm1, 1.0, %v1400_v1  ;;  %vm100_vm2 = vcmp.eq.s32.totalorder %v1501_v21, %v82_v23 }
  0x9b   :  { %1034 = vmatprep.mubr.msk.f32.mxu0 %vm126_vm0, %v861_v24  ;;  %v863_v27 = vsel %vm100_vm2, 1.0, %v1400_v1 }
  0x9c   :  { %v79_v25 = vpop.permute.xlu0 %78 }
  0x9d   :  { %v85_v26 = vpop.permute.xlu1 %84  ;;  %vm99_vm3 = vcmp.eq.s32.totalorder %v1501_v21, %v79_v25  ;;  %v769_v25 = vld [vmem:[#allocation4 + $0x40] sm:$0xff] }
  0x9e   :  { %vm101_vm4 = vcmp.eq.s32.totalorder %v1501_v21, %v85_v26  ;;  %v862_v28 = vsel %vm99_vm3, 1.0, %v1400_v1  ;;  %v768_v26 = vld [vmem:[#allocation4 + $0x38] sm:$0xff] }
  0x9f   :  { %1035 = vmatmul.mubr.msk.f32.vlgmr.msra.gmra.mxu0 %vm126_vm0, %v862_v28  ;;  %v864_v29 = vsel %vm101_vm4, 1.0, %v1400_v1  ;;  %v766_v28 = vld [vmem:[#allocation4 + $0x28] sm:$0xff] }
  0xa0   :  { %v88_v30 = vpop.permute.xlu0 %87  ;;  %1037 = vmatprep.mubr.msk.f32.mxu0 %vm126_vm0, %v863_v27  ;;  %1082 = vmatpush3.msra.mxu0 %v1472_v13  ;;  %v767_v27 = vld [vmem:[#allocation4 + $0x30] sm:$0xff] }
  0xa1   :  { %v91_v31 = vpop.permute.xlu1 %90  ;;  %vm102_vm5 = vcmp.eq.s32.totalorder %v1501_v21, %v88_v30  ;;  %1083 = vmatprep.subr.mxu0 %v1400_v1  ;;  %v764_v30 = vld [vmem:[#allocation4 + $0x18] sm:$0xff] }
  0xa2   :  { %vm103_vm6 = vcmp.eq.s32.totalorder %v1501_v21, %v91_v31  ;;  %v865_v32 = vsel %vm102_vm5, 1.0, %v1400_v1  ;;  %1084 = vmatpush3.msra.mxu0 %v1474_v14  ;;  %v763_v31 = vld [vmem:[#allocation4 + $0x10] sm:$0xff] }
  0xa3   :  { %1038 = vmatmul.mubr.msk.f32.gmra.mxu0 %vm126_vm0, %v864_v29  ;;  %1085 = vmatprep.subr.mxu0 %v1400_v1  ;;  %v866_v33 = vsel %vm103_vm6, 1.0, %v1400_v1  ;;  %v765_v29 = vld [vmem:[#allocation4 + $0x20] sm:$0xff] }
  0xa4   :  { %1040 = vmatprep.mubr.msk.f32.mxu0 %vm126_vm0, %v865_v32  ;;  %v94_v34 = vpop.permute.xlu0 %93  ;;  %1086 = vmatpush3.msra.mxu0 %v1478_v15  ;;  %v762_v32 = vld [vmem:[#allocation4 + $0x8] sm:$0xff] }
  0xa5   :  { %vm104_vm7 = vcmp.eq.s32.totalorder %v1501_v21, %v94_v34  ;;  %1087 = vmatprep.subr.mxu0 %v1400_v1  ;;  %v97_v48 = vpop.permute.xlu1 %96 }
  0xa6   :  { %v867_v35 = vsel %vm104_vm7, 1.0, %v1400_v1  ;;  %1088 = vmatpush3.msra.mxu0 %v1483_v16  ;;  %vm105_vm9 = vcmp.eq.s32.totalorder %v1501_v21, %v97_v48 }
  0xa7   :  { %1041 = vmatmul.mubr.msk.f32.gmra.mxu0 %vm126_vm0, %v866_v33  ;;  %1089 = vmatprep.subr.mxu0 %v1400_v1  ;;  %v868_v49 = vsel %vm105_vm9, 1.0, %v1400_v1  ;;  %v761_v33 = vld [vmem:[#allocation4] sm:$0xff] }
  0xa8   :  { %1043 = vmatprep.mubr.msk.f32.mxu0 %vm126_vm0, %v867_v35  ;;  %1090 = vmatpush3.msra.mxu0 %v1487_v17 }
  0xa9   :  { %1091 = vmatprep.subr.mxu0 %v1400_v1 }
  0xaa   :  { %1092 = vmatpush3.msra.mxu0 %v1491_v18 }
  0xab   :  { %1093 = vmatprep.subr.mxu0 %v1400_v1  ;;  %1044 = vmatmul.mubr.msk.f32.gmra.mxu0 %vm126_vm0, %v868_v49 }
  0xac   :  { %1094 = vmatpush3.msra.mxu0 %v1495_v19  ;;  %1113 = vmatprep.mubr.msk.f32.mxu0 %vm1401_vm8, %v1400_v1 }
  0xad   :  { %1095 = vmatprep.subr.mxu0 %v1400_v1 }
  0xae   :  { %1096 = vmatpush3.msra.mxu0 %v1538_v36 }
  0xaf   :  { %1097 = vmatprep.subr.mxu0 %v1400_v1 }
  0xb0   :  { %1098 = vmatpush3.msra.mxu0 %v1543_v37 }
  0xb1   :  { %1099 = vmatprep.subr.mxu0 %v1400_v1 }
  0xb2   :  { %1100 = vmatpush3.msra.mxu0 %v1549_v38 }
  0xb3   :  { %1101 = vmatprep.subr.mxu0 %v1400_v1 }
  0xb4   :  { %1102 = vmatpush3.msra.mxu0 %v1551_v39 }
  0xb5   :  { %1103 = vmatprep.subr.mxu0 %v1400_v1 }
  0xb6   :  { %1104 = vmatpush3.msra.mxu0 %v1558_v40 }
  0xb7   :  { %1105 = vmatprep.subr.mxu0 %v1400_v1 }
  0xb8   :  { %1106 = vmatpush3.msra.mxu0 %v1564_v41 }
  0xb9   :  { %1107 = vmatprep.subr.mxu0 %v1400_v1 }
  0xba   :  { %1108 = vmatpush3.msra.mxu0 %v1570_v42 }
  0xbb   :  { %1109 = vmatprep.subr.mxu0 %v1400_v1 }
  0xbc   :  { %1110 = vmatpush3.msra.mxu0 %v1576_v43 }
  0xbd   :  { %1111 = vmatprep.subr.mxu0 %v1400_v1 }
  0xbe   :  { %1112 = vmatpush3.msra.mxu0 %v1582_v44 }
  0xbf   :  { %1151 = vmatprep.subr.mxu0 %v1400_v1 }
 0x15f   :  { %v1036_v46 = vpop.f32.mrf.mxu0 }
 0x161   :  { %v217_v47 = vpop.f32.mrf.mxu0 }
 0x162   :  { %1335 = vtanh.f32 %v217_v47 }
 0x163   :  { %v1039_v55 = vpop.f32.mrf.mxu0 }
 0x165   :  { %v227_v56 = vpop.f32.mrf.mxu0 }
 0x167   :  { %v1670_v57 = vpop.f32.mrf.mxu0 }
 0x169   :  { %v1672_v58 = vpop.f32.mrf.mxu0 }
 0x16b   :  { %v1674_v59 = vpop.f32.mrf.mxu0 }
 0x16d   :  { %v1676_v60 = vpop.f32.mrf.mxu0 }
 0x16f   :  { %v1336_v50 = vpop.eup %1335 }
 0x170   :  { %1079 = vmatmul.mubr.f32.vlgmr.msra.gmra.mxu1 %v1336_v50 }
 0x171   :  { %1117 = vmatpush3.msra.mxu1 %v1472_v13  ;;  %1148 = vmatprep.mubr.msk.f32.mxu1 %vm1401_vm8, %v1400_v1 }
 0x172   :  { %1118 = vmatprep.subr.mxu1 %v1400_v1 }
 0x173   :  { %1119 = vmatpush3.msra.mxu1 %v1474_v14 }
 0x174   :  { %1120 = vmatprep.subr.mxu1 %v1400_v1 }
 0x175   :  { %1121 = vmatpush3.msra.mxu1 %v1478_v15 }
 0x176   :  { %1122 = vmatprep.subr.mxu1 %v1400_v1 }
 0x177   :  { %1123 = vmatpush3.msra.mxu1 %v1483_v16 }
 0x178   :  { %1124 = vmatprep.subr.mxu1 %v1400_v1 }
 0x179   :  { %1125 = vmatpush3.msra.mxu1 %v1487_v17 }
 0x17a   :  { %1126 = vmatprep.subr.mxu1 %v1400_v1 }
 0x17b   :  { %1127 = vmatpush3.msra.mxu1 %v1491_v18 }
 0x17c   :  { %1128 = vmatprep.subr.mxu1 %v1400_v1 }
 0x17d   :  { %1129 = vmatpush3.msra.mxu1 %v1495_v19 }
 0x17e   :  { %1130 = vmatprep.subr.mxu1 %v1400_v1 }
 0x17f   :  { %1131 = vmatpush3.msra.mxu1 %v1538_v36 }
 0x180   :  { %1132 = vmatprep.subr.mxu1 %v1400_v1 }
 0x181   :  { %1133 = vmatpush3.msra.mxu1 %v1543_v37 }
 0x182   :  { %1134 = vmatprep.subr.mxu1 %v1400_v1 }
 0x183   :  { %1135 = vmatpush3.msra.mxu1 %v1549_v38 }
 0x184   :  { %1136 = vmatprep.subr.mxu1 %v1400_v1 }
 0x185   :  { %1137 = vmatpush3.msra.mxu1 %v1551_v39 }
 0x186   :  { %1138 = vmatprep.subr.mxu1 %v1400_v1 }
 0x187   :  { %1139 = vmatpush3.msra.mxu1 %v1558_v40 }
 0x188   :  { %1140 = vmatprep.subr.mxu1 %v1400_v1 }
 0x189   :  { %1141 = vmatpush3.msra.mxu1 %v1564_v41 }
 0x18a   :  { %1142 = vmatprep.subr.mxu1 %v1400_v1 }
 0x18b   :  { %1143 = vmatpush3.msra.mxu1 %v1570_v42 }
 0x18c   :  { %1144 = vmatprep.subr.mxu1 %v1400_v1 }
 0x18d   :  { %1145 = vmatpush3.msra.mxu1 %v1576_v43 }
 0x18e   :  { %1146 = vmatprep.subr.mxu1 %v1400_v1 }
 0x18f   :  { %1147 = vmatpush3.msra.mxu1 %v1582_v44 }
 0x190   :  { %1186 = vmatprep.subr.mxu1 %v1400_v1 }
 0x230   :  { %v323_v51 = vpop.f32.mrf.mxu1 }
 0x231   :  { %v327_v52 = vadd.f32 %v1036_v46, %v323_v51 }
 0x232   :  { %v1080_v53 = vpop.f32.mrf.mxu1 }
 0x233   :  { %1337 = vtanh.f32 %v327_v52 }
 0x240   :  { %v1338_v54 = vpop.eup %1337 }
 0x241   :  { %1114 = vmatmul.mubr.f32.vlgmr.msra.gmra.mxu0 %v1338_v54 }
 0x242   :  { %1152 = vmatpush3.msra.mxu0 %v1472_v13  ;;  %1183 = vmatprep.mubr.msk.f32.mxu0 %vm1401_vm8, %v1400_v1 }
 0x243   :  { %1153 = vmatprep.subr.mxu0 %v1400_v1 }
 0x244   :  { %1154 = vmatpush3.msra.mxu0 %v1474_v14 }
 0x245   :  { %1155 = vmatprep.subr.mxu0 %v1400_v1 }
 0x246   :  { %1156 = vmatpush3.msra.mxu0 %v1478_v15 }
 0x247   :  { %1157 = vmatprep.subr.mxu0 %v1400_v1 }
 0x248   :  { %1158 = vmatpush3.msra.mxu0 %v1483_v16 }
 0x249   :  { %1159 = vmatprep.subr.mxu0 %v1400_v1 }
 0x24a   :  { %1160 = vmatpush3.msra.mxu0 %v1487_v17 }
 0x24b   :  { %1161 = vmatprep.subr.mxu0 %v1400_v1 }
 0x24c   :  { %1162 = vmatpush3.msra.mxu0 %v1491_v18 }
 0x24d   :  { %1163 = vmatprep.subr.mxu0 %v1400_v1 }
 0x24e   :  { %1164 = vmatpush3.msra.mxu0 %v1495_v19 }
 0x24f   :  { %1165 = vmatprep.subr.mxu0 %v1400_v1 }
 0x250   :  { %1166 = vmatpush3.msra.mxu0 %v1538_v36 }
 0x251   :  { %1167 = vmatprep.subr.mxu0 %v1400_v1 }
 0x252   :  { %1168 = vmatpush3.msra.mxu0 %v1543_v37 }
 0x253   :  { %1169 = vmatprep.subr.mxu0 %v1400_v1 }
 0x254   :  { %1170 = vmatpush3.msra.mxu0 %v1549_v38 }
 0x255   :  { %1171 = vmatprep.subr.mxu0 %v1400_v1 }
 0x256   :  { %1172 = vmatpush3.msra.mxu0 %v1551_v39 }
 0x257   :  { %1173 = vmatprep.subr.mxu0 %v1400_v1 }
 0x258   :  { %1174 = vmatpush3.msra.mxu0 %v1558_v40 }
 0x259   :  { %1175 = vmatprep.subr.mxu0 %v1400_v1 }
 0x25a   :  { %1176 = vmatpush3.msra.mxu0 %v1564_v41 }
 0x25b   :  { %1177 = vmatprep.subr.mxu0 %v1400_v1 }
 0x25c   :  { %1178 = vmatpush3.msra.mxu0 %v1570_v42 }
 0x25d   :  { %1179 = vmatprep.subr.mxu0 %v1400_v1 }
 0x25e   :  { %1180 = vmatpush3.msra.mxu0 %v1576_v43 }
 0x25f   :  { %1181 = vmatprep.subr.mxu0 %v1400_v1 }
 0x260   :  { %1182 = vmatpush3.msra.mxu0 %v1582_v44 }
 0x261   :  { %1221 = vmatprep.subr.mxu0 %v1400_v1 }
 0x301   :  { %v395_v61 = vpop.f32.mrf.mxu0 }
 0x302   :  { %v399_v62 = vadd.f32 %v395_v61, %v227_v56 }
 0x303   :  { %v1115_v63 = vpop.f32.mrf.mxu0 }
 0x304   :  { %1339 = vtanh.f32 %v399_v62 }
 0x311   :  { %v1340_v0 = vpop.eup %1339 }
 0x312   :  { %1149 = vmatmul.mubr.f32.vlgmr.msra.gmra.mxu1 %v1340_v0 }
 0x313   :  { %1187 = vmatpush3.msra.mxu1 %v1472_v13  ;;  %1218 = vmatprep.mubr.msk.f32.mxu1 %vm1401_vm8, %v1400_v1 }
 0x314   :  { %1188 = vmatprep.subr.mxu1 %v1400_v1 }
 0x315   :  { %1189 = vmatpush3.msra.mxu1 %v1474_v14 }
 0x316   :  { %1190 = vmatprep.subr.mxu1 %v1400_v1 }
 0x317   :  { %1191 = vmatpush3.msra.mxu1 %v1478_v15 }
 0x318   :  { %1192 = vmatprep.subr.mxu1 %v1400_v1 }
 0x319   :  { %1193 = vmatpush3.msra.mxu1 %v1483_v16 }
 0x31a   :  { %1194 = vmatprep.subr.mxu1 %v1400_v1 }
 0x31b   :  { %1195 = vmatpush3.msra.mxu1 %v1487_v17 }
 0x31c   :  { %1196 = vmatprep.subr.mxu1 %v1400_v1 }
 0x31d   :  { %1197 = vmatpush3.msra.mxu1 %v1491_v18 }
 0x31e   :  { %1198 = vmatprep.subr.mxu1 %v1400_v1 }
 0x31f   :  { %1199 = vmatpush3.msra.mxu1 %v1495_v19 }
 0x320   :  { %1200 = vmatprep.subr.mxu1 %v1400_v1 }
 0x321   :  { %1201 = vmatpush3.msra.mxu1 %v1538_v36 }
 0x322   :  { %1202 = vmatprep.subr.mxu1 %v1400_v1 }
 0x323   :  { %1203 = vmatpush3.msra.mxu1 %v1543_v37 }
 0x324   :  { %1204 = vmatprep.subr.mxu1 %v1400_v1 }
 0x325   :  { %1205 = vmatpush3.msra.mxu1 %v1549_v38 }
 0x326   :  { %1206 = vmatprep.subr.mxu1 %v1400_v1 }
 0x327   :  { %1207 = vmatpush3.msra.mxu1 %v1551_v39 }
 0x328   :  { %1208 = vmatprep.subr.mxu1 %v1400_v1 }
 0x329   :  { %1209 = vmatpush3.msra.mxu1 %v1558_v40 }
 0x32a   :  { %1210 = vmatprep.subr.mxu1 %v1400_v1 }
 0x32b   :  { %1211 = vmatpush3.msra.mxu1 %v1564_v41 }
 0x32c   :  { %1212 = vmatprep.subr.mxu1 %v1400_v1 }
 0x32d   :  { %1213 = vmatpush3.msra.mxu1 %v1570_v42 }
 0x32e   :  { %1214 = vmatprep.subr.mxu1 %v1400_v1 }
 0x32f   :  { %1215 = vmatpush3.msra.mxu1 %v1576_v43 }
 0x330   :  { %1216 = vmatprep.subr.mxu1 %v1400_v1 }
 0x331   :  { %1217 = vmatpush3.msra.mxu1 %v1582_v44 }
 0x332   :  { %1256 = vmatprep.subr.mxu1 %v1400_v1 }
 0x3d2   :  { %v467_v2 = vpop.f32.mrf.mxu1 }
 0x3d3   :  { %v471_v3 = vadd.f32 %v1039_v55, %v467_v2 }
 0x3d4   :  { %v1150_v4 = vpop.f32.mrf.mxu1 }
 0x3d5   :  { %1341 = vtanh.f32 %v471_v3 }
 0x3e2   :  { %v1342_v5 = vpop.eup %1341 }
 0x3e3   :  { %1184 = vmatmul.mubr.f32.vlgmr.msra.gmra.mxu0 %v1342_v5 }
 0x3e4   :  { %1222 = vmatpush3.msra.mxu0 %v1472_v13  ;;  %1253 = vmatprep.mubr.msk.f32.mxu0 %vm1401_vm8, %v1400_v1 }
 0x3e5   :  { %1223 = vmatprep.subr.mxu0 %v1400_v1 }
 0x3e6   :  { %1224 = vmatpush3.msra.mxu0 %v1474_v14 }
 0x3e7   :  { %1225 = vmatprep.subr.mxu0 %v1400_v1 }
 0x3e8   :  { %1226 = vmatpush3.msra.mxu0 %v1478_v15 }
 0x3e9   :  { %1227 = vmatprep.subr.mxu0 %v1400_v1 }
 0x3ea   :  { %1228 = vmatpush3.msra.mxu0 %v1483_v16 }
 0x3eb   :  { %1229 = vmatprep.subr.mxu0 %v1400_v1 }
 0x3ec   :  { %1230 = vmatpush3.msra.mxu0 %v1487_v17 }
 0x3ed   :  { %1231 = vmatprep.subr.mxu0 %v1400_v1 }
 0x3ee   :  { %1232 = vmatpush3.msra.mxu0 %v1491_v18 }
 0x3ef   :  { %1233 = vmatprep.subr.mxu0 %v1400_v1 }
 0x3f0   :  { %1234 = vmatpush3.msra.mxu0 %v1495_v19 }
 0x3f1   :  { %1235 = vmatprep.subr.mxu0 %v1400_v1 }
 0x3f2   :  { %1236 = vmatpush3.msra.mxu0 %v1538_v36 }
 0x3f3   :  { %1237 = vmatprep.subr.mxu0 %v1400_v1 }
 0x3f4   :  { %1238 = vmatpush3.msra.mxu0 %v1543_v37 }
 0x3f5   :  { %1239 = vmatprep.subr.mxu0 %v1400_v1 }
 0x3f6   :  { %1240 = vmatpush3.msra.mxu0 %v1549_v38 }
 0x3f7   :  { %1241 = vmatprep.subr.mxu0 %v1400_v1 }
 0x3f8   :  { %1242 = vmatpush3.msra.mxu0 %v1551_v39 }
 0x3f9   :  { %1243 = vmatprep.subr.mxu0 %v1400_v1 }
 0x3fa   :  { %1244 = vmatpush3.msra.mxu0 %v1558_v40 }
 0x3fb   :  { %1245 = vmatprep.subr.mxu0 %v1400_v1 }
 0x3fc   :  { %1246 = vmatpush3.msra.mxu0 %v1564_v41 }
 0x3fd   :  { %1247 = vmatprep.subr.mxu0 %v1400_v1 }
 0x3fe   :  { %1248 = vmatpush3.msra.mxu0 %v1570_v42 }
 0x3ff   :  { %1249 = vmatprep.subr.mxu0 %v1400_v1 }
 0x400   :  { %1250 = vmatpush3.msra.mxu0 %v1576_v43 }
 0x401   :  { %1251 = vmatprep.subr.mxu0 %v1400_v1 }
 0x402   :  { %1252 = vmatpush3.msra.mxu0 %v1582_v44 }
 0x403   :  { %1291 = vmatprep.subr.mxu0 %v1400_v1 }
 0x4a3   :  { %v539_v6 = vpop.f32.mrf.mxu0 }
 0x4a4   :  { %v543_v7 = vadd.f32 %v539_v6, %v1672_v58 }
 0x4a5   :  { %v1185_v8 = vpop.f32.mrf.mxu0 }
 0x4a6   :  { %1343 = vtanh.f32 %v543_v7 }
 0x4b3   :  { %v1344_v9 = vpop.eup %1343 }
 0x4b4   :  { %1219 = vmatmul.mubr.f32.vlgmr.msra.gmra.mxu1 %v1344_v9 }
 0x4b5   :  { %1257 = vmatpush3.msra.mxu1 %v1472_v13  ;;  %1288 = vmatprep.mubr.msk.f32.mxu1 %vm1401_vm8, %v1400_v1 }
 0x4b6   :  { %1258 = vmatprep.subr.mxu1 %v1400_v1 }
 0x4b7   :  { %1259 = vmatpush3.msra.mxu1 %v1474_v14  ;;  %v776_v14 = vld [vmem:[#allocation4 + $0x78] sm:$0xff] }
 0x4b8   :  { %1260 = vmatprep.subr.mxu1 %v1400_v1 }
 0x4b9   :  { %1261 = vmatpush3.msra.mxu1 %v1478_v15  ;;  %v775_v15 = vld [vmem:[#allocation4 + $0x70] sm:$0xff] }
 0x4ba   :  { %1262 = vmatprep.subr.mxu1 %v1400_v1 }
 0x4bb   :  { %1263 = vmatpush3.msra.mxu1 %v1483_v16  ;;  %v774_v16 = vld [vmem:[#allocation4 + $0x68] sm:$0xff] }
 0x4bc   :  { %1264 = vmatprep.subr.mxu1 %v1400_v1 }
 0x4bd   :  { %1265 = vmatpush3.msra.mxu1 %v1487_v17  ;;  %v773_v17 = vld [vmem:[#allocation4 + $0x60] sm:$0xff] }
 0x4be   :  { %1266 = vmatprep.subr.mxu1 %v1400_v1 }
 0x4bf   :  { %1267 = vmatpush3.msra.mxu1 %v1491_v18  ;;  %v772_v18 = vld [vmem:[#allocation4 + $0x58] sm:$0xff] }
 0x4c0   :  { %1268 = vmatprep.subr.mxu1 %v1400_v1 }
 0x4c1   :  { %1269 = vmatpush3.msra.mxu1 %v1495_v19  ;;  %v771_v19 = vld [vmem:[#allocation4 + $0x50] sm:$0xff] }
 0x4c2   :  { %1270 = vmatprep.subr.mxu1 %v1400_v1 }
 0x4c3   :  { %1271 = vmatpush3.msra.mxu1 %v1538_v36 }
 0x4c4   :  { %1272 = vmatprep.subr.mxu1 %v1400_v1 }
 0x4c5   :  { %1273 = vmatpush3.msra.mxu1 %v1543_v37 }
 0x4c6   :  { %1274 = vmatprep.subr.mxu1 %v1400_v1 }
 0x4c7   :  { %1275 = vmatpush3.msra.mxu1 %v1549_v38  ;;  %v877_v38 = vld [vmem:[%s1810_s4] ss:$0 sm:$0xff] }
 0x4c8   :  { %1276 = vmatprep.subr.mxu1 %v1400_v1 }
 0x4c9   :  { %1277 = vmatpush3.msra.mxu1 %v1551_v39 }
 0x4ca   :  { %1278 = vmatprep.subr.mxu1 %v1400_v1 }
 0x4cb   :  { %1279 = vmatpush3.msra.mxu1 %v1558_v40 }
 0x4cc   :  { %1280 = vmatprep.subr.mxu1 %v1400_v1 }
 0x4cd   :  { %1281 = vmatpush3.msra.mxu1 %v1564_v41 }
 0x4ce   :  { %1282 = vmatprep.subr.mxu1 %v1400_v1 }
 0x4cf   :  { %1283 = vmatpush3.msra.mxu1 %v1570_v42 }
 0x4d0   :  { %1284 = vmatprep.subr.mxu1 %v1400_v1 }
 0x4d1   :  { %1285 = vmatpush3.msra.mxu1 %v1576_v43 }
 0x4d2   :  { %1286 = vmatprep.subr.mxu1 %v1400_v1 }
 0x4d3   :  { %1287 = vmatpush3.msra.mxu1 %v1582_v44 }
 0x574   :  { %v611_v10 = vpop.f32.mrf.mxu1 }
 0x575   :  { %v615_v11 = vadd.f32 %v1670_v57, %v611_v10 }
 0x576   :  { %v1220_v12 = vpop.f32.mrf.mxu1 }
 0x577   :  { %1345 = vtanh.f32 %v615_v11 }
 0x584   :  { %v1346_v13 = vpop.eup %1345 }
 0x585   :  { %1254 = vmatmul.mubr.f32.vlgmr.msra.gmra.mxu0 %v1346_v13 }
 0x586   :  { %1323 = vmatprep.mubr.msk.f32.mxu0 %vm1401_vm8, %v1400_v1  ;;  %1292 = vmatpush3.msra.mxu0 %v776_v14 }
 0x587   :  { %1293 = vmatprep.subr.mxu0 %v1400_v1 }
 0x588   :  { %1294 = vmatpush3.msra.mxu0 %v775_v15 }
 0x589   :  { %1295 = vmatprep.subr.mxu0 %v1400_v1 }
 0x58a   :  { %1296 = vmatpush3.msra.mxu0 %v774_v16 }
 0x58b   :  { %1297 = vmatprep.subr.mxu0 %v1400_v1 }
 0x58c   :  { %1298 = vmatpush3.msra.mxu0 %v773_v17 }
 0x58d   :  { %1299 = vmatprep.subr.mxu0 %v1400_v1 }
 0x58e   :  { %1300 = vmatpush3.msra.mxu0 %v772_v18 }
 0x58f   :  { %1301 = vmatprep.subr.mxu0 %v1400_v1 }
 0x590   :  { %1302 = vmatpush3.msra.mxu0 %v771_v19 }
 0x591   :  { %1303 = vmatprep.subr.mxu0 %v1400_v1 }
 0x592   :  { %1304 = vmatpush3.msra.mxu0 %v770_v20 }
 0x593   :  { %1305 = vmatprep.subr.mxu0 %v1400_v1 }
 0x594   :  { %1306 = vmatpush3.msra.mxu0 %v769_v25 }
 0x595   :  { %1307 = vmatprep.subr.mxu0 %v1400_v1 }
 0x596   :  { %1308 = vmatpush3.msra.mxu0 %v768_v26 }
 0x597   :  { %1309 = vmatprep.subr.mxu0 %v1400_v1 }
 0x598   :  { %1310 = vmatpush3.msra.mxu0 %v767_v27 }
 0x599   :  { %1311 = vmatprep.subr.mxu0 %v1400_v1 }
 0x59a   :  { %1312 = vmatpush3.msra.mxu0 %v766_v28 }
 0x59b   :  { %1313 = vmatprep.subr.mxu0 %v1400_v1 }
 0x59c   :  { %1314 = vmatpush3.msra.mxu0 %v765_v29 }
 0x59d   :  { %1315 = vmatprep.subr.mxu0 %v1400_v1 }
 0x59e   :  { %1316 = vmatpush3.msra.mxu0 %v764_v30 }
 0x59f   :  { %1317 = vmatprep.subr.mxu0 %v1400_v1 }
 0x5a0   :  { %1318 = vmatpush3.msra.mxu0 %v763_v31 }
 0x5a1   :  { %1319 = vmatprep.subr.mxu0 %v1400_v1 }
 0x5a2   :  { %1320 = vmatpush3.msra.mxu0 %v762_v32 }
 0x5a3   :  { %1321 = vmatprep.subr.mxu0 %v1400_v1 }
 0x5a4   :  { %1322 = vmatpush3.msra.mxu0 %v761_v33 }
 0x645   :  { %v683_v21 = vpop.f32.mrf.mxu0 }
 0x646   :  { %v687_v22 = vadd.f32 %v683_v21, %v1676_v60 }
 0x647   :  { %v1255_v23 = vpop.f32.mrf.mxu0 }
 0x648   :  { %1347 = vtanh.f32 %v687_v22 }
 0x655   :  { %v1348_v24 = vpop.eup %1347 }
 0x656   :  { %1289 = vmatmul.mubr.f32.vlgmr.msra.gmra.mxu1 %v1348_v24 }
 0x716   :  { %v755_v34 = vpop.f32.mrf.mxu1 }
 0x717   :  { %v759_v35 = vadd.f32 %v1674_v59, %v755_v34 }
 0x718   :  { %v1290_v36 = vpop.f32.mrf.mxu1 }
 0x719   :  { %1349 = vtanh.f32 %v759_v35 }
 0x726   :  { %v1350_v37 = vpop.eup %1349 }
 0x727   :  { %1324 = vmatmul.mubr.f32.vlgmr.msra.gmra.mxu0 %v1350_v37 }
 0x7e7   :  { %v850_v39 = vpop.f32.mrf.mxu0 }
 0x7e8   :  { %v851_v40 = vadd.f32 %v877_v38, %v850_v39 }
 0x7e9   :  { %v1325_v41 = vpop.f32.mrf.mxu0 }
 0x7ea   :  { %854 = vst [vmem:[%s1811_s5] sm:$0xff] %v851_v40 }
 0x7eb   :  { %859 = vsyncpa [#allocation3], 1 }
 0x7ec   :  { %860 = vsyncpa [#allocation5], 1 }

</bundles_post_ra>
